<compile_context>
chip_gen: v7x
topology: tpu7x:2x2x1
jax: 0.10.0
libtpu: 0.0.40
codegen_flags: <defaults>
</compile_context>

<pallas_src>
import jax
import jax.numpy as jnp
from jax.experimental import pallas as pl
from jax.experimental.pallas import tpu as pltpu


def _cdiv(a, b):
    return (a + b - 1) // b


def _round_up(x, m):
    return _cdiv(x, m) * m


_TARGET_STEP_BYTES = 1 << 20   # >= ~1 MiB activation traffic per grid step
_ACT_VMEM_BUDGET = 20 << 20    # activation VMEM budget (fits v7x's 64 MiB)
_MAX_TILE_L = 8192             # avoid oversized tiles (spill / v5e store slot)


def _choose_tile_l(L_pad, c_in, c_out, c_hid_max, itemsize, n_batch):
    # Target per-step activation transfer.
    per_col_traffic = max((c_in + c_out) * itemsize, 1)
    tile_l = _round_up(_cdiv(_TARGET_STEP_BYTES, per_col_traffic), 128)
    # VMEM cap: double-buffered in/out blocks + f32 accumulator + compute copy.
    per_col_vmem = 2 * (c_in + c_out) * itemsize + 2 * c_hid_max * (4 + itemsize)
    vmem_cap = max((_ACT_VMEM_BUDGET // per_col_vmem) // 128 * 128, 128)
    tile_l = max(min(tile_l, vmem_cap, _MAX_TILE_L, L_pad), 128)
    # v7x megacore: keep at least 2 grid steps when possible.
    if n_batch * _cdiv(L_pad, tile_l) < 2 and L_pad >= 256:
        tile_l = _round_up(_cdiv(L_pad, 2), 128)
    return tile_l


def _make_ffn_kernel(num_layers, compute_dtype):
    """Kernel refs = (x_ref, w0, b0, w1, b1, ..., w_{L-1}, b_{L-1}, o_ref)."""

    def kernel(*refs):
        x_ref = refs[0]
        o_ref = refs[-1]
        wb = refs[1:-1]
        # Operands stay in the compute (I/O) dtype for the MXU; accumulation
        # is f32 via preferred_element_type.  Bias add / ReLU run in f32.
        h = x_ref[0] if len(x_ref.shape) == 3 else x_ref[...]   # (C_in, tile_l)
        for i in range(num_layers):
            w = wb[2 * i][...]                   # (C_out_i, C_in_i), compute dtype
            b = wb[2 * i + 1][...]               # (C_out_i, 1), f32
            acc = jnp.dot(w, h, preferred_element_type=jnp.float32) + b
            if i < num_layers - 1:
                acc = jnp.maximum(acc, 0.0)      # ReLU, all but last layer
                h = acc.astype(compute_dtype)    # back to MXU dtype for next dot
            else:
                h = acc
        out = h.astype(o_ref.dtype)
        if len(o_ref.shape) == 3:
            o_ref[0] = out
        else:
            o_ref[...] = out

    return kernel


def conv1d_ffn_pallas(x_ncl, weights, biases, *, tile_l=None):
    """x_ncl: (N, C_in, L).

    weights[i]: (C_out_i, C_in_i)  (PyTorch Conv1d weight with the size-1
    kernel dim squeezed).  biases[i]: (C_out_i,).
    """
    num_layers = len(weights)
    N, C_in, L = x_ncl.shape
    C_out = weights[-1].shape[0]
    compute_dtype = x_ncl.dtype
    itemsize = jnp.dtype(compute_dtype).itemsize
    c_hid_max = max(int(w.shape[0]) for w in weights)

    # Pad L only to the next multiple of 128 (cheap).  Pointwise conv =>
    # padded / overhanging columns are independent and sliced off / masked.
    L_pad = _round_up(L, 128)
    x_p = jnp.pad(x_ncl, ((0, 0), (0, 0), (0, L_pad - L))) if L_pad != L else x_ncl

    if tile_l is None:
        tile_l = _choose_tile_l(L_pad, C_in, C_out, c_hid_max, itemsize, N)
    else:
        tile_l = max(min(_round_up(tile_l, 128), L_pad), 128)
    grid = (N, _cdiv(L_pad, tile_l))

    # Parameters: compute dtype for the MXU operands, f32 for the bias add.
    w_args = [w.astype(compute_dtype) for w in weights]
    b_args = [b.astype(jnp.float32).reshape(-1, 1) for b in biases]

    # Advisory cost estimate so XLA schedules surrounding ops well.
    flops = 2 * N * L_pad * sum(int(w.shape[0]) * int(w.shape[1]) for w in weights)
    bytes_accessed = (
        int(x_p.size) * itemsize
        + N * C_out * L_pad * itemsize
        + sum(int(w.size) for w in w_args) * itemsize
        + sum(int(b.size) for b in b_args) * 4
    )
    cost = pl.CostEstimate(flops=flops, transcendentals=0,
                           bytes_accessed=bytes_accessed)

    # Explicit VMEM budget (re-derived for v7x's 64 MiB).
    param_bytes = (sum(int(w.size) for w in w_args) * itemsize
                   + sum(int(b.size) for b in b_args) * 4)
    est_vmem = (2 * (C_in + C_out) * tile_l * itemsize
                + 2 * c_hid_max * tile_l * (4 + itemsize)
                + 2 * param_bytes)
    vmem_limit = int(min(max(2 * est_vmem, 32 << 20), 48 << 20))

    kernel = _make_ffn_kernel(num_layers, compute_dtype)
    out_shape = jax.ShapeDtypeStruct((N, C_out, L_pad), compute_dtype)

    def call(single_buffer_params, squeeze_batch):
        if squeeze_batch:
            x_block = (pl.Squeezed(), C_in, tile_l)
            o_block = (pl.Squeezed(), C_out, tile_l)
        else:
            x_block = (1, C_in, tile_l)
            o_block = (1, C_out, tile_l)
        param_kwargs = ({"pipeline_mode": pl.Buffered(1)}
                        if single_buffer_params else {})
        in_specs = [pl.BlockSpec(x_block, lambda n, l: (n, 0, l))]
        kernel_args = [x_p]
        for w, b in zip(w_args, b_args):
            in_specs.append(pl.BlockSpec(w.shape, lambda n, l: (0, 0),
                                         **param_kwargs))
            in_specs.append(pl.BlockSpec(b.shape, lambda n, l: (0, 0),
                                         **param_kwargs))
            kernel_args.append(w)
            kernel_args.append(b)
        out_spec = pl.BlockSpec(o_block, lambda n, l: (n, 0, l))
        return pl.pallas_call(
            kernel,
            out_shape=out_shape,
            grid_spec=pltpu.PrefetchScalarGridSpec(
                num_scalar_prefetch=0,
                grid=grid,
                in_specs=in_specs,
                out_specs=out_spec,
            ),
            compiler_params=pltpu.CompilerParams(
                dimension_semantics=("parallel", "parallel"),
                vmem_limit_bytes=vmem_limit),
            cost_estimate=cost,
        )(*kernel_args)

    try:
        out_pad = call(True, True)
    except Exception:
        # Fallback if this JAX build rejects Buffered(1)/Squeezed on the
        # top-level pipeline; semantics are identical, just default buffering.
        out_pad = call(False, False)

    return out_pad[:, :, :L] if L_pad != L else out_pad


def init_params(key, input_dim, hidden_dim, output_dim, num_layers):
    """Deterministic init mirroring nn.Conv1d(n, k, 1) shapes.

    PyTorch Conv1d weight is (C_out, C_in, 1); we store (C_out, C_in).
    """
    h = [hidden_dim] * (num_layers - 1)
    dims_in = [input_dim] + h
    dims_out = h + [output_dim]
    weights, biases = [], []
    for n, k in zip(dims_in, dims_out):
        key, wk, bk = jax.random.split(key, 3)
        bound = 1.0 / (n ** 0.5)  # PyTorch default uniform bound
        weights.append(jax.random.uniform(wk, (k, n), jnp.float32, -bound, bound))
        biases.append(jax.random.uniform(bk, (k,), jnp.float32, -bound, bound))
    return weights, biases


def reference_ffn(x_ncl, weights, biases):
    """Plain-JAX reference of the PyTorch forward (NCL layout throughout)."""
    num_layers = len(weights)
    h = x_ncl
    for i, (w, b) in enumerate(zip(weights, biases)):
        h = jnp.einsum("ncl,oc->nol", h, w) + b[None, :, None]
        if i < num_layers - 1:
            h = jnp.maximum(h, 0.0)
    return h


if __name__ == "__main__":
    # Small shapes consistent with the module: x is (batch, input_dim, length).
    batch, input_dim, hidden_dim, output_dim, length = 2, 4, 32, 8, 16
    num_layers = 3

    key = jax.random.PRNGKey(0)
    key, xk = jax.random.split(key)
    x = jax.random.normal(xk, (batch, input_dim, length), dtype=jnp.float32)

    weights, biases = init_params(key, input_dim, hidden_dim, output_dim, num_layers)
    ref = reference_ffn(x, weights, biases)

    # f32 I/O path: exact (to tolerance) match against the reference.
    out = jax.block_until_ready(conv1d_ffn_pallas(x, weights, biases))
    assert out.shape == (batch, output_dim, length), out.shape
    assert jnp.allclose(out, ref, atol=1e-5, rtol=1e-5), "f32 mismatch vs reference"

    # bf16 I/O path: bf16 MXU operands with f32 accumulation (loose tolerance).
    out_bf16 = jax.block_until_ready(
        conv1d_ffn_pallas(x.astype(jnp.bfloat16), weights, biases))
    assert out_bf16.dtype == jnp.bfloat16
    assert jnp.allclose(out_bf16.astype(jnp.float32), ref, atol=0.15, rtol=0.1), \
        "bf16 mismatch vs reference"

    print("KERNEL_OK")
</pallas_src>

<mosaic_0001>
module attributes {stable_mosaic.version = 11 : i64} {
  func.func @kernel(%arg0: i32, %arg1: i32, %arg2: memref<1x4x128xf32, #tpu.memory_space<vmem>>, %arg3: memref<32x4xf32, #tpu.memory_space<vmem>>, %arg4: memref<32x1xf32, #tpu.memory_space<vmem>>, %arg5: memref<32x32xf32, #tpu.memory_space<vmem>>, %arg6: memref<32x1xf32, #tpu.memory_space<vmem>>, %arg7: memref<8x32xf32, #tpu.memory_space<vmem>>, %arg8: memref<8x1xf32, #tpu.memory_space<vmem>>, %arg9: memref<1x8x128xf32, #tpu.memory_space<vmem>>) attributes {dimension_semantics = [#tpu.dimension_semantics<parallel>, #tpu.dimension_semantics<parallel>], iteration_bounds = array<i64: 2, 1>, scalar_prefetch = 0 : i64, scratch_operands = 0 : i64, tpu.core_type = #tpu.core_type<tc>, window_params = [{transform_indices = @transform_0, window_bounds = array<i64: 1, 4, 128>}, {pipeline_mode = #tpu.pipeline_mode<synchronous>, transform_indices = @transform_1, window_bounds = array<i64: 32, 4>}, {pipeline_mode = #tpu.pipeline_mode<synchronous>, transform_indices = @transform_2, window_bounds = array<i64: 32, 1>}, {pipeline_mode = #tpu.pipeline_mode<synchronous>, transform_indices = @transform_3, window_bounds = array<i64: 32, 32>}, {pipeline_mode = #tpu.pipeline_mode<synchronous>, transform_indices = @transform_4, window_bounds = array<i64: 32, 1>}, {pipeline_mode = #tpu.pipeline_mode<synchronous>, transform_indices = @transform_5, window_bounds = array<i64: 8, 32>}, {pipeline_mode = #tpu.pipeline_mode<synchronous>, transform_indices = @transform_6, window_bounds = array<i64: 8, 1>}, {transform_indices = @transform_7, window_bounds = array<i64: 1, 8, 128>}]} {
    %c0 = arith.constant 0 : index
    %c0_0 = arith.constant 0 : index
    %c0_1 = arith.constant 0 : index
    %0 = vector.load %arg2[%c0, %c0_0, %c0_1] : memref<1x4x128xf32, #tpu.memory_space<vmem>>, vector<1x4x128xf32>
    %1 = vector.shape_cast %0 : vector<1x4x128xf32> to vector<4x128xf32>
    %c0_2 = arith.constant 0 : index
    %c0_3 = arith.constant 0 : index
    %2 = vector.load %arg3[%c0_2, %c0_3] : memref<32x4xf32, #tpu.memory_space<vmem>>, vector<32x4xf32>
    %c0_4 = arith.constant 0 : index
    %c0_5 = arith.constant 0 : index
    %3 = vector.load %arg4[%c0_4, %c0_5] : memref<32x1xf32, #tpu.memory_space<vmem>>, vector<32x1xf32>
    %cst = arith.constant dense<0.000000e+00> : vector<32x128xf32>
    %4 = tpu.matmul %2, %1, %cst {dimension_numbers = #tpu.dot_dimension_numbers<[1], [0], [0], [1], [0, 0, 1, 1], [], []>} : vector<32x4xf32>, vector<4x128xf32>, vector<32x128xf32> -> vector<32x128xf32>
    %5 = vector.broadcast %3 : vector<32x1xf32> to vector<32x128xf32>
    %6 = arith.addf %4, %5 : vector<32x128xf32>
    %cst_6 = arith.constant 0.000000e+00 : f32
    %7 = vector.broadcast %cst_6 : f32 to vector<32x128xf32>
    %8 = arith.maximumf %6, %7 : vector<32x128xf32>
    %c0_7 = arith.constant 0 : index
    %c0_8 = arith.constant 0 : index
    %9 = vector.load %arg5[%c0_7, %c0_8] : memref<32x32xf32, #tpu.memory_space<vmem>>, vector<32x32xf32>
    %c0_9 = arith.constant 0 : index
    %c0_10 = arith.constant 0 : index
    %10 = vector.load %arg6[%c0_9, %c0_10] : memref<32x1xf32, #tpu.memory_space<vmem>>, vector<32x1xf32>
    %cst_11 = arith.constant dense<0.000000e+00> : vector<32x128xf32>
    %11 = tpu.matmul %9, %8, %cst_11 {dimension_numbers = #tpu.dot_dimension_numbers<[1], [0], [0], [1], [0, 0, 1, 1], [], []>} : vector<32x32xf32>, vector<32x128xf32>, vector<32x128xf32> -> vector<32x128xf32>
    %12 = vector.broadcast %10 : vector<32x1xf32> to vector<32x128xf32>
    %13 = arith.addf %11, %12 : vector<32x128xf32>
    %cst_12 = arith.constant 0.000000e+00 : f32
    %14 = vector.broadcast %cst_12 : f32 to vector<32x128xf32>
    %15 = arith.maximumf %13, %14 : vector<32x128xf32>
    %c0_13 = arith.constant 0 : index
    %c0_14 = arith.constant 0 : index
    %16 = vector.load %arg7[%c0_13, %c0_14] : memref<8x32xf32, #tpu.memory_space<vmem>>, vector<8x32xf32>
    %c0_15 = arith.constant 0 : index
    %c0_16 = arith.constant 0 : index
    %17 = vector.load %arg8[%c0_15, %c0_16] : memref<8x1xf32, #tpu.memory_space<vmem>>, vector<8x1xf32>
    %cst_17 = arith.constant dense<0.000000e+00> : vector<8x128xf32>
    %18 = tpu.matmul %16, %15, %cst_17 {dimension_numbers = #tpu.dot_dimension_numbers<[1], [0], [0], [1], [0, 0, 1, 1], [], []>} : vector<8x32xf32>, vector<32x128xf32>, vector<8x128xf32> -> vector<8x128xf32>
    %19 = vector.broadcast %17 : vector<8x1xf32> to vector<8x128xf32>
    %20 = arith.addf %18, %19 : vector<8x128xf32>
    %c0_18 = arith.constant 0 : index
    %c0_19 = arith.constant 0 : index
    %c0_20 = arith.constant 0 : index
    %21 = vector.load %arg9[%c0_18, %c0_19, %c0_20] : memref<1x8x128xf32, #tpu.memory_space<vmem>>, vector<1x8x128xf32>
    %22 = vector.shape_cast %21 : vector<1x8x128xf32> to vector<8x128xf32>
    %23 = vector.shape_cast %20 : vector<8x128xf32> to vector<1x8x128xf32>
    tpu.vector_store %arg9[%c0_18, %c0_19, %c0_20], %23 {strides = array<i32>} : memref<1x8x128xf32, #tpu.memory_space<vmem>>, vector<1x8x128xf32>,
    return
  }
  func.func @transform_0(%arg0: i32, %arg1: i32) -> (i32, i32, i32) {
    %c0_i32 = arith.constant 0 : i32
    %c0_i32_0 = arith.constant 0 : i32
    return %arg0, %c0_i32, %arg1 : i32, i32, i32
  }
  func.func @transform_1(%arg0: i32, %arg1: i32) -> (i32, i32) {
    %c0_i32 = arith.constant 0 : i32
    %c0_i32_0 = arith.constant 0 : i32
    %c0_i32_1 = arith.constant 0 : i32
    return %c0_i32, %c0_i32_0 : i32, i32
  }
  func.func @transform_2(%arg0: i32, %arg1: i32) -> (i32, i32) {
    %c0_i32 = arith.constant 0 : i32
    %c0_i32_0 = arith.constant 0 : i32
    %c0_i32_1 = arith.constant 0 : i32
    return %c0_i32, %c0_i32_0 : i32, i32
  }
  func.func @transform_3(%arg0: i32, %arg1: i32) -> (i32, i32) {
    %c0_i32 = arith.constant 0 : i32
    %c0_i32_0 = arith.constant 0 : i32
    %c0_i32_1 = arith.constant 0 : i32
    return %c0_i32, %c0_i32_0 : i32, i32
  }
  func.func @transform_4(%arg0: i32, %arg1: i32) -> (i32, i32) {
    %c0_i32 = arith.constant 0 : i32
    %c0_i32_0 = arith.constant 0 : i32
    %c0_i32_1 = arith.constant 0 : i32
    return %c0_i32, %c0_i32_0 : i32, i32
  }
  func.func @transform_5(%arg0: i32, %arg1: i32) -> (i32, i32) {
    %c0_i32 = arith.constant 0 : i32
    %c0_i32_0 = arith.constant 0 : i32
    %c0_i32_1 = arith.constant 0 : i32
    return %c0_i32, %c0_i32_0 : i32, i32
  }
  func.func @transform_6(%arg0: i32, %arg1: i32) -> (i32, i32) {
    %c0_i32 = arith.constant 0 : i32
    %c0_i32_0 = arith.constant 0 : i32
    %c0_i32_1 = arith.constant 0 : i32
    return %c0_i32, %c0_i32_0 : i32, i32
  }
  func.func @transform_7(%arg0: i32, %arg1: i32) -> (i32, i32, i32) {
    %c0_i32 = arith.constant 0 : i32
    %c0_i32_0 = arith.constant 0 : i32
    return %arg0, %c0_i32, %arg1 : i32, i32, i32
  }
}

module attributes {stable_mosaic.version = 11 : i64} {
  func.func @kernel(%arg0: i32, %arg1: i32, %arg2: memref<1x4x128xf32, #tpu.memory_space<vmem>>, %arg3: memref<32x4xf32, #tpu.memory_space<vmem>>, %arg4: memref<32x1xf32, #tpu.memory_space<vmem>>, %arg5: memref<32x32xf32, #tpu.memory_space<vmem>>, %arg6: memref<32x1xf32, #tpu.memory_space<vmem>>, %arg7: memref<8x32xf32, #tpu.memory_space<vmem>>, %arg8: memref<8x1xf32, #tpu.memory_space<vmem>>, %arg9: memref<1x8x128xf32, #tpu.memory_space<vmem>>) attributes {dimension_semantics = [#tpu.dimension_semantics<parallel>, #tpu.dimension_semantics<parallel>], iteration_bounds = array<i64: 2, 1>, scalar_prefetch = 0 : i64, scratch_operands = 0 : i64, tpu.core_type = #tpu.core_type<tc>, window_params = [{transform_indices = @transform_0, window_bounds = array<i64: 1, 4, 128>}, {pipeline_mode = #tpu.pipeline_mode<synchronous>, transform_indices = @transform_1, window_bounds = array<i64: 32, 4>}, {pipeline_mode = #tpu.pipeline_mode<synchronous>, transform_indices = @transform_2, window_bounds = array<i64: 32, 1>}, {pipeline_mode = #tpu.pipeline_mode<synchronous>, transform_indices = @transform_3, window_bounds = array<i64: 32, 32>}, {pipeline_mode = #tpu.pipeline_mode<synchronous>, transform_indices = @transform_4, window_bounds = array<i64: 32, 1>}, {pipeline_mode = #tpu.pipeline_mode<synchronous>, transform_indices = @transform_5, window_bounds = array<i64: 8, 32>}, {pipeline_mode = #tpu.pipeline_mode<synchronous>, transform_indices = @transform_6, window_bounds = array<i64: 8, 1>}, {transform_indices = @transform_7, window_bounds = array<i64: 1, 8, 128>}]} {
    %c0 = arith.constant 0 : index
    %c0_0 = arith.constant 0 : index
    %c0_1 = arith.constant 0 : index
    %0 = vector.load %arg2[%c0, %c0_0, %c0_1] : memref<1x4x128xf32, #tpu.memory_space<vmem>>, vector<1x4x128xf32>
    %1 = vector.shape_cast %0 : vector<1x4x128xf32> to vector<4x128xf32>
    %c0_2 = arith.constant 0 : index
    %c0_3 = arith.constant 0 : index
    %2 = vector.load %arg3[%c0_2, %c0_3] : memref<32x4xf32, #tpu.memory_space<vmem>>, vector<32x4xf32>
    %c0_4 = arith.constant 0 : index
    %c0_5 = arith.constant 0 : index
    %3 = vector.load %arg4[%c0_4, %c0_5] : memref<32x1xf32, #tpu.memory_space<vmem>>, vector<32x1xf32>
    %cst = arith.constant dense<0.000000e+00> : vector<32x128xf32>
    %4 = tpu.matmul %2, %1, %cst {dimension_numbers = #tpu.dot_dimension_numbers<[1], [0], [0], [1], [0, 0, 1, 1], [], []>} : vector<32x4xf32>, vector<4x128xf32>, vector<32x128xf32> -> vector<32x128xf32>
    %5 = vector.broadcast %3 : vector<32x1xf32> to vector<32x128xf32>
    %6 = arith.addf %4, %5 : vector<32x128xf32>
    %cst_6 = arith.constant 0.000000e+00 : f32
    %7 = vector.broadcast %cst_6 : f32 to vector<32x128xf32>
    %8 = arith.maximumf %6, %7 : vector<32x128xf32>
    %c0_7 = arith.constant 0 : index
    %c0_8 = arith.constant 0 : index
    %9 = vector.load %arg5[%c0_7, %c0_8] : memref<32x32xf32, #tpu.memory_space<vmem>>, vector<32x32xf32>
    %c0_9 = arith.constant 0 : index
    %c0_10 = arith.constant 0 : index
    %10 = vector.load %arg6[%c0_9, %c0_10] : memref<32x1xf32, #tpu.memory_space<vmem>>, vector<32x1xf32>
    %cst_11 = arith.constant dense<0.000000e+00> : vector<32x128xf32>
    %11 = tpu.matmul %9, %8, %cst_11 {dimension_numbers = #tpu.dot_dimension_numbers<[1], [0], [0], [1], [0, 0, 1, 1], [], []>} : vector<32x32xf32>, vector<32x128xf32>, vector<32x128xf32> -> vector<32x128xf32>
    %12 = vector.broadcast %10 : vector<32x1xf32> to vector<32x128xf32>
    %13 = arith.addf %11, %12 : vector<32x128xf32>
    %cst_12 = arith.constant 0.000000e+00 : f32
    %14 = vector.broadcast %cst_12 : f32 to vector<32x128xf32>
    %15 = arith.maximumf %13, %14 : vector<32x128xf32>
    %c0_13 = arith.constant 0 : index
    %c0_14 = arith.constant 0 : index
    %16 = vector.load %arg7[%c0_13, %c0_14] : memref<8x32xf32, #tpu.memory_space<vmem>>, vector<8x32xf32>
    %c0_15 = arith.constant 0 : index
    %c0_16 = arith.constant 0 : index
    %17 = vector.load %arg8[%c0_15, %c0_16] : memref<8x1xf32, #tpu.memory_space<vmem>>, vector<8x1xf32>
    %cst_17 = arith.constant dense<0.000000e+00> : vector<8x128xf32>
    %18 = tpu.matmul %16, %15, %cst_17 {dimension_numbers = #tpu.dot_dimension_numbers<[1], [0], [0], [1], [0, 0, 1, 1], [], []>} : vector<8x32xf32>, vector<32x128xf32>, vector<8x128xf32> -> vector<8x128xf32>
    %19 = vector.broadcast %17 : vector<8x1xf32> to vector<8x128xf32>
    %20 = arith.addf %18, %19 : vector<8x128xf32>
    %c0_18 = arith.constant 0 : index
    %c0_19 = arith.constant 0 : index
    %c0_20 = arith.constant 0 : index
    %21 = vector.load %arg9[%c0_18, %c0_19, %c0_20] : memref<1x8x128xf32, #tpu.memory_space<vmem>>, vector<1x8x128xf32>
    %22 = vector.shape_cast %21 : vector<1x8x128xf32> to vector<8x128xf32>
    %23 = vector.shape_cast %20 : vector<8x128xf32> to vector<1x8x128xf32>
    tpu.vector_store %arg9[%c0_18, %c0_19, %c0_20], %23 {strides = array<i32>} : memref<1x8x128xf32, #tpu.memory_space<vmem>>, vector<1x8x128xf32>,
    return
  }
  func.func @transform_0(%arg0: i32, %arg1: i32) -> (i32, i32, i32) {
    %c0_i32 = arith.constant 0 : i32
    %c0_i32_0 = arith.constant 0 : i32
    return %arg0, %c0_i32, %arg1 : i32, i32, i32
  }
  func.func @transform_1(%arg0: i32, %arg1: i32) -> (i32, i32) {
    %c0_i32 = arith.constant 0 : i32
    %c0_i32_0 = arith.constant 0 : i32
    %c0_i32_1 = arith.constant 0 : i32
    return %c0_i32, %c0_i32_0 : i32, i32
  }
  func.func @transform_2(%arg0: i32, %arg1: i32) -> (i32, i32) {
    %c0_i32 = arith.constant 0 : i32
    %c0_i32_0 = arith.constant 0 : i32
    %c0_i32_1 = arith.constant 0 : i32
    return %c0_i32, %c0_i32_0 : i32, i32
  }
  func.func @transform_3(%arg0: i32, %arg1: i32) -> (i32, i32) {
    %c0_i32 = arith.constant 0 : i32
    %c0_i32_0 = arith.constant 0 : i32
    %c0_i32_1 = arith.constant 0 : i32
    return %c0_i32, %c0_i32_0 : i32, i32
  }
  func.func @transform_4(%arg0: i32, %arg1: i32) -> (i32, i32) {
    %c0_i32 = arith.constant 0 : i32
    %c0_i32_0 = arith.constant 0 : i32
    %c0_i32_1 = arith.constant 0 : i32
    return %c0_i32, %c0_i32_0 : i32, i32
  }
  func.func @transform_5(%arg0: i32, %arg1: i32) -> (i32, i32) {
    %c0_i32 = arith.constant 0 : i32
    %c0_i32_0 = arith.constant 0 : i32
    %c0_i32_1 = arith.constant 0 : i32
    return %c0_i32, %c0_i32_0 : i32, i32
  }
  func.func @transform_6(%arg0: i32, %arg1: i32) -> (i32, i32) {
    %c0_i32 = arith.constant 0 : i32
    %c0_i32_0 = arith.constant 0 : i32
    %c0_i32_1 = arith.constant 0 : i32
    return %c0_i32, %c0_i32_0 : i32, i32
  }
  func.func @transform_7(%arg0: i32, %arg1: i32) -> (i32, i32, i32) {
    %c0_i32 = arith.constant 0 : i32
    %c0_i32_0 = arith.constant 0 : i32
    return %arg0, %c0_i32, %arg1 : i32, i32, i32
  }
}

</mosaic_0001>

<bundles_post_ra>
// kernel: tpu_custom_call.1
= control target key start
LH: loop header
LB: loop body
LE: loop exit
PB: predicated region body
PF: predicated region fallthrough
CT: control target
= control target key end

     0   :  { %12 = vsyncpa [#allocation3], 0  ;;  %s1178_s0 = inlined_call_operand.vmem [shape: f32[2,4,128], index: 0, kind: input, shape index: {}]   ;;  %s1179_s1 = inlined_call_operand.vmem [shape: f32[32,4], index: 1, kind: input, shape index: {}]   ;;  %s1180_s2 = inlined_call_operand.vmem [shape: f32[32,1], index: 2, kind: input, shape index: {}]   ;;  %s1181_s3 = inlined_call_operand.vmem [shape: f32[32,32], index: 3, kind: input, shape index: {}]   ;;  %s1182_s4 = inlined_call_operand.vmem [shape: f32[32,1], index: 4, kind: input, shape index: {}]   ;;  %s1183_s5 = inlined_call_operand.vmem [shape: f32[8,32], index: 5, kind: input, shape index: {}]   ;;  %s1184_s6 = inlined_call_operand.vmem [shape: f32[8,1], index: 6, kind: input, shape index: {}]   ;;  %s1185_s7 = inlined_call_operand.hbm [shape: f32[2,8,128], index: 7, kind: output, shape index: {}]  }
   0x1   :  { %14 = vsyncpa [#allocation3 + $0x1], 0  ;;  %s1003_s24 = smov 0   ;;  %s1005_s25 = smov 0  }
   0x2   :  { %s1007_s26 = smov 0   ;;  %s1009_s27 = smov 0  }
   0x3   :  { %s1011_s28 = smov 0   ;;  %s1013_s29 = smov 0  }
   0x4 LB: > { %s731_s30 = sadd.s32 4294967295, %s956_s29   ;;  %s732_s8 = sadd.s32 4294967294, %s956_s29   ;;  %s956_s29 = sphi %s1013_s29, %s20_s29   ;;  %s952_s28 = sphi %s1011_s28, %s1192_s28   ;;  %s948_s27 = sphi %s1009_s27, %s1191_s27   ;;  %s944_s26 = sphi %s1007_s26, %s1190_s26   ;;  %s940_s25 = sphi %s1005_s25, %s1189_s25   ;;  %s936_s24 = sphi %s1003_s24, %s1188_s24  }
   0x5   : > { %s32_s9 = sadd.s32 1, %s952_s28  ;;  %s195_s10 = sadd.s32 1, %s944_s26 }
   0x6   : > { %p34_p0 = scmp.ge.s32.totalorder %s32_s9, 2  ;;  %p205_p1 = scmp.ne.s32.totalorder %s944_s26, %s940_s25 }
   0x7   : > { %p206_p2 = scmp.eq.s32.totalorder %s731_s30, 1  ;;  %p211_p3 = scmp.ne.s32.totalorder %s940_s25, %s936_s24 }
   0x8   : > { %s1194_s9 = smov (%p34_p0, %s32_s9), 0  ;;  %p212_p5 = scmp.eq.s32.totalorder %s732_s8, 1 }
   0x9   : > { %p1043_p4 = por %p206_p2, %p205_p1  ;;  %s190_s12 = ssub.s32 %s952_s28, %s1194_s9 }
   0xa   : > { %p735_p6 = scmp.ge.s32.totalorder %s956_s29, 1  ;;  %p193_p7 = scmp.eq.s32.totalorder %s190_s12, 0 }
   0xb   : > { %p1050_p8 = por %p212_p5, %p211_p3  ;;  %p258_p9 = scmp.lt.s32.totalorder %s956_s29, 3 }
   0xc   : > { %s1056_s14 = scalar_select %p193_p7, %s944_s26, %s195_s10  }
   0xd   : > { %p259_p10 = pnand %p735_p6, %p258_p9 }
   0xe   : > { %p292_p11 = scmp.lt.s32.totalorder (!%p259_p10), %s948_s27, 1  ;;  %v300_v0 = vld [vmem:[%s1179_s1] sm:$0xff] (!%p259_p10)  ;;  %vm328_vm0 = vcmask (!%p259_p10), 31744   ;;  %v958_v2 = vmov (!%p259_p10), 0   ;;  %v306_v3 = vld [vmem:[%s1180_s2 + $0x10] sm:$0xff] (!%p259_p10)  ;;  %vm341_vm1 = vcmask (!%p259_p10), 1043456  }
   0xf   : > { %262 = sbr.rel (%p259_p10) target bundleno = 710 (0x2c6), region = 48  ;;  %772 = vmatprep.mubr.msk.f32.mxu0 (!%p259_p10), %vm328_vm0, %v300_v0  ;;  %v304_v1 = vld [vmem:[%s1180_s2] sm:$0xff] (!%p259_p10)  ;;  %876 = vset.pattern.permute.xlu0 (!%p259_p10), %v958_v2  ;;  %v305_v4 = vld [vmem:[%s1180_s2 + $0x8] sm:$0xff] (!%p259_p10)  ;;  %v307_v5 = vld [vmem:[%s1180_s2 + $0x18] sm:$0xff] (!%p259_p10)  ;;  %vm462_vm2 = vcmask (!%p259_p10), 261120   ;;  %v959_v37 = vmov (!%p259_p10), 0.0|0.0  }
  0x10   : > { %877 = vset.pattern.permute.xlu1 (!%p259_p10), %v958_v2  ;;  %310 = vperm.xlu0 (!%p259_p10), %876, %v304_v1   ;;  %v301_v7 = vld [vmem:[%s1179_s1 + $0x8] sm:$0xff] (!%p259_p10)  ;;  %v302_v8 = vld [vmem:[%s1179_s1 + $0x10] sm:$0xff] (!%p259_p10)  ;;  %v438_v9 = vld [vmem:[%s1182_s4] sm:$0xff] (!%p259_p10)  ;;  %vm960_vm3 = vmmov (!%p259_p10), 0   ;;  %v961_v38 = vmov (!%p259_p10), 0.0   ;;  %s289_s17 = sand.u32 (!%p259_p10), 1, %s940_s25  }
  0x11   : > { %320 = vperm.xlu1 (!%p259_p10), %877, %v306_v3   ;;  %v439_v10 = vld [vmem:[%s1182_s4 + $0x8] sm:$0xff] (!%p259_p10)  ;;  %v303_v11 = vld [vmem:[%s1179_s1 + $0x18] sm:$0xff] (!%p259_p10)  ;;  %v440_v12 = vld [vmem:[%s1182_s4 + $0x10] sm:$0xff] (!%p259_p10)  ;;  %s736_s18 = sshll.u32 (!%p259_p10), %s289_s17, 3  ;;  %s646_s8 = scalar_lea.sflag (!%p259_p10), [#allocation3], %s289_s17 }
  0x12   : > { %v441_v13 = vld [vmem:[%s1182_s4 + $0x18] sm:$0xff] (!%p259_p10)  ;;  %v565_v14 = vld [vmem:[%s1184_s6] sm:$0xff] (!%p259_p10)  ;;  %v435_v34 = vld [vmem:[%s1181_s3 + $0x8] sm:$0xff] (!%p259_p10)  ;;  %s291_s20 = scalar_lea.vmem (!%p259_p10), [#allocation2], %s736_s18 }
  0x13   : > { %v434_v15 = vld [vmem:[%s1181_s3] sm:$0xff] (!%p259_p10)  ;;  %v436_v35 = vld [vmem:[%s1181_s3 + $0x10] sm:$0xff] (!%p259_p10)  ;;  %v437_v36 = vld [vmem:[%s1181_s3 + $0x18] sm:$0xff] (!%p259_p10)  ;;  %s660_s21 = sshll.u32 (!%p259_p10), %s291_s20, 4  ;;  %s1133_s21 = int_to_ptr.vmem [resolvable:$true] %s660_s21 }
  0x14   : > { %315 = vperm.xlu0 (!%p259_p10), %876, %v305_v4   ;;  %786 = vmatprep.mubr.msk.f32.mxu1 (!%p259_p10), %vm462_vm2, %v434_v15  ;;  %v564_v57 = vld [vmem:[%s1183_s5] sm:$0xff] (!%p259_p10)  ;;  %s878_s10 = scalar_lea.vmem (!%p259_p10), %s1133_s21, 128 }
  0x15   : > { %325 = vperm.xlu1 (!%p259_p10), %877, %v307_v5   ;;  %p879_p12 = scmp.ne.s32.totalorder (!%p259_p10), %s1133_s21, %s878_s10 }
  0x16   : > { %s293_s19 = scalar_select %p292_p11, %s948_s27, 1 }
  0x17   : > { %p880_p13 = pnand %p879_p12, %p1043_p4 }
  0x18   : > { %s737_s22 = sshll.u32 %s293_s19, 2  ;;  %444 = vperm.xlu0 %876, %v438_v9   ;;  %s749_s19 = sshll.u32 %s948_s27, 7 }
  0x19   : > { %s298_s12 = scalar_lea.vmem %s1178_s0, %s737_s22  ;;  %449 = vperm.xlu1 %877, %v439_v10   ;;  %s1131_s30 = scalar_lea.hbm %s1185_s7, %s749_s19 }
  0x1a   : > { %v299_v6 = vld [vmem:[%s298_s12] sm:$0xf]  ;;  %p881_p0 = pneg %p880_p13  ;;  %s962_s27 = smov [#allocation2]  }
  0x1b   : > { %770 = vmatprep.subr.msk.mxu0 %vm341_vm1, %v299_v6  ;;  %s882_s12 = sshll.u32 %s962_s27, 4  ;;  %s883_s12 = int_to_ptr.vmem [resolvable:$false] %s882_s12 }
  0x1c   : > { %771 = vmatpush3.msk.msra.mxu0 %vm341_vm1, %v299_v6  ;;  %454 = vperm.xlu0 %876, %v440_v12   ;;  %s884_s15 = scalar_lea.vmem %s883_s12, 256  ;;  %p885_p1 = scmp.lt.s32.totalorder %s1133_s21, %s883_s12 }
  0x1d   : > { %773 = vmatmul.mubr.msk.f32.vlgmr.msra.gmra.mrb[0].mxu0 %vm328_vm0, %v301_v7  ;;  %459 = vperm.xlu1 %877, %v441_v13   ;;  %p886_p2 = scmp.lt.s32.totalorder %s884_s15, %s878_s10 }
  0x1e   : > { %775 = vmatprep.mubr.msk.f32.mxu0 %vm328_vm0, %v302_v8  ;;  %811 = vmatprep.subr.bf16.mxu0 %v959_v37 }
  0x1f   : > { %p887_p3 = por %p886_p2, %p885_p1 }
  0x20   : > { %568 = vperm.xlu0 %876, %v565_v14  }
  0x21   : > { %776 = vmatmul.mubr.msk.f32.gmra.mrb[2].mxu0 %vm328_vm0, %v303_v11  ;;  %p888_p5 = pnand %p887_p3, %p881_p0 }
  0x22   : > { %800 = vmatprep.mubr.msk.f32.mxu0 %vm960_vm3, %v961_v38 }
  0x8f   : > { %v311_v16 = vpop.permute.xlu0 %310 }
  0x90   : > { %v321_v17 = vpop.permute.xlu1 %320 }
  0x93   : > { %v316_v18 = vpop.permute.xlu0 %315 }
  0x94   : > { %v326_v24 = vpop.permute.xlu1 %325 }
  0x97   : > { %v445_v40 = vpop.permute.xlu0 %444 }
  0x98   : > { %v450_v39 = vpop.permute.xlu1 %449 }
  0x9b   : > { %v455_v49 = vpop.permute.xlu0 %454 }
  0x9c   : > { %v460_v46 = vpop.permute.xlu1 %459 }
  0x9f   : > { %v569_v58 = vpop.permute.xlu0 %568 }
  0xf0   : > { %v774_v19 = vpop.f32.mrb[0].mxu0 }
  0xf1   : > { %v417_v20 = vadd.f32 %v774_v19, %v316_v18  ;;  %v411_v21 = vpop.f32.mrb[1].mxu0 }
  0xf2   : > { %v412_v22 = vadd.f32 %v411_v21, %v311_v16 }
  0xf3   : > { %v431_v23 = vmax.f32 %v417_v20, 0.0 }
  0xf4   : > { %v430_v25 = vmax.f32 %v412_v22, 0.0  ;;  %v777_v26 = vpop.f32.mrb[2].mxu0 }
  0xf5   : > { %v427_v27 = vadd.f32 %v777_v26, %v326_v24  ;;  %v421_v28 = vpop.f32.mrb[3].mxu0 }
  0xf6   : > { %v422_v29 = vadd.f32 %v421_v28, %v321_v17  ;;  %v803_v30 = vpack.c.bf16 %v431_v23, %v430_v25 }
  0xf7   : > { %v433_v31 = vmax.f32 %v427_v27, 0.0 }
  0xf8   : > { %v432_v32 = vmax.f32 %v422_v29, 0.0  ;;  %804 = vmatprep.subr.bf16.mxu1 %v803_v30 }
  0xf9   : > { %806 = vmatpush3.bf16.msra.mxu1 %v803_v30 }
  0xfa   : > { %v807_v33 = vpack.c.bf16 %v433_v31, %v432_v32 }
  0xfc   : > { %808 = vmatprep.subr.bf16.mxu1 %v807_v33 }
  0xfd   : > { %810 = vmatpush3.bf16.msra.mxu1 %v807_v33 }
 0x100   : > { %787 = vmatmul.mubr.msk.f32.vlgmr.msra.gmra.mrb[0].mxu1 %vm462_vm2, %v435_v34 }
 0x101   : > { %789 = vmatprep.mubr.msk.f32.mxu1 %vm462_vm2, %v436_v35 }
 0x104   : > { %790 = vmatmul.mubr.msk.f32.gmra.mrb[2].mxu1 %vm462_vm2, %v437_v36 }
 0x1d3   : > { %v788_v41 = vpop.f32.mrb[0].mxu1 }
 0x1d4   : > { %v547_v42 = vadd.f32 %v788_v41, %v450_v39  ;;  %v541_v43 = vpop.f32.mrb[1].mxu1 }
 0x1d5   : > { %v542_v44 = vadd.f32 %v541_v43, %v445_v40 }
 0x1d6   : > { %v561_v45 = vmax.f32 %v547_v42, 0.0 }
 0x1d7   : > { %v560_v47 = vmax.f32 %v542_v44, 0.0  ;;  %v791_v48 = vpop.f32.mrb[2].mxu1 }
 0x1d8   : > { %v557_v50 = vadd.f32 %v791_v48, %v460_v46  ;;  %v551_v51 = vpop.f32.mrb[3].mxu1 }
 0x1d9   : > { %v812_v52 = vpack.c.bf16 %v561_v45, %v560_v47  ;;  %v552_v53 = vadd.f32 %v551_v51, %v455_v49 }
 0x1da   : > { %v563_v54 = vmax.f32 %v557_v50, 0.0 }
 0x1db   : > { %v562_v55 = vmax.f32 %v552_v53, 0.0  ;;  %813 = vmatpush3.bf16.msra.mxu0 %v812_v52 }
 0x1dc   : > { %814 = vmatprep.subr.bf16.mxu0 %v959_v37 }
 0x1dd   : > { %v815_v56 = vpack.c.bf16 %v563_v54, %v562_v55 }
 0x1df   : > { %816 = vmatpush3.bf16.msra.mxu0 %v815_v56 }
 0x1e2   : > { %801 = vmatmul.mubr.msk.f32.vlgmr.msra.gmra.mrb[4].mxu0 %vm462_vm2, %v564_v57 }
 0x2b5   : > { %v640_v59 = vpop.f32.mrb[4].mxu0 }
 0x2b6   : > { %v641_v60 = vadd.f32 %v640_v59, %v569_v58  ;;  %v802_v61 = vpop.f32.mrb[5].mxu0 }
 0x2b8   : > { %644 = vst [vmem:[%s291_s20] sm:$0xff] %v641_v60 }
 0x2b9   : > { %891 = shalt.err (!%p888_p5)
}
 0x2ba   : > { %s892_s16 = scalar_lea.hbm %s1131_s30, 128  ;;  %s896_s19 = scalar_lea.hbm %s1185_s7, 256 }
 0x2bb   : > { %p893_p6 = scmp.ne.s32.totalorder %s1131_s30, %s892_s16  ;;  %p897_p10 = scmp.lt.u32.totalorder %s1131_s30, %s1185_s7 }
 0x2bc   : > { %p898_p11 = scmp.lt.u32.totalorder %s896_s19, %s892_s16  ;;  %p900_p13 = scmp.lt.u32.totalorder %s892_s16, %s1131_s30 }
 0x2bd   : > { %p894_p7 = pnand %p893_p6, %p1043_p4 }
 0x2be   : > { %p899_p12 = por %p898_p11, %p897_p10 }
 0x2bf   : > { %p895_p9 = pneg %p894_p7 }
 0x2c0   : > { %p901_p0 = por %p900_p13, %p899_p12 }
 0x2c2   : > { %p902_p1 = pnand %p901_p0, %p895_p9 }
 0x2c4   : > { %905 = shalt.err (!%p902_p1)
}
 0x2c5   : > { %817 = dma.vmem_to_hbm [thread:$0]  (%p1043_p4), %s1133_s21, 128, %s1131_s30, %s646_s8  }
 0x2c6 PF: > { %p823_p2 = scmp.ge.s32.totalorder %s956_s29, 2  ;;  %s672_s22 = sand.u32 1, %s936_s24  }
 0x2c7   : > { %s673_s10 = scalar_lea.sflag [#allocation3], %s672_s22 }
 0x2c8   : > { %p820_p3 = pnand %p823_p2, %p1050_p8 }
 0x2ca   : > { %931 = dma.done.wait (!%p820_p3), %s673_s10, 128  }
 0x2cb   : > { %933 = vsyncadd (!%p820_p3), %s673_s10, 4294967168  ;;  %s20_s29 = sadd.s32 1, %s956_s29   ;;  %s1188_s24 = smov %s940_s25 }
 0x2cc   : > { %p17_p5 = scmp.ge.s32.totalorder %s20_s29, 4   ;;  %s1189_s25 = smov %s944_s26 }
 0x2cd   : > { %s1190_s26 = smov %s1056_s14  ;;  %s1191_s27 = smov %s952_s28 }
 0x2ce   : > { %s1192_s28 = smov %s1194_s9  ;;  %19 = sbr.rel (!%p17_p5) target bundleno = 4 (0x4), region = 83 }
 0x2d5   :  { %678 = vsyncpa [#allocation3], 1 }
 0x2d6   :  { %680 = vsyncpa [#allocation3 + $0x1], 1 }

// kernel: tpu_custom_call.1
= control target key start
LH: loop header
LB: loop body
LE: loop exit
PB: predicated region body
PF: predicated region fallthrough
CT: control target
= control target key end

     0   :  { %12 = vsyncpa [#allocation3], 0  ;;  %s1178_s0 = inlined_call_operand.vmem [shape: f32[2,4,128], index: 0, kind: input, shape index: {}]   ;;  %s1179_s1 = inlined_call_operand.vmem [shape: f32[32,4], index: 1, kind: input, shape index: {}]   ;;  %s1180_s2 = inlined_call_operand.vmem [shape: f32[32,1], index: 2, kind: input, shape index: {}]   ;;  %s1181_s3 = inlined_call_operand.vmem [shape: f32[32,32], index: 3, kind: input, shape index: {}]   ;;  %s1182_s4 = inlined_call_operand.vmem [shape: f32[32,1], index: 4, kind: input, shape index: {}]   ;;  %s1183_s5 = inlined_call_operand.vmem [shape: f32[8,32], index: 5, kind: input, shape index: {}]   ;;  %s1184_s6 = inlined_call_operand.vmem [shape: f32[8,1], index: 6, kind: input, shape index: {}]   ;;  %s1185_s7 = inlined_call_operand.hbm [shape: f32[2,8,128], index: 7, kind: output, shape index: {}]  }
   0x1   :  { %14 = vsyncpa [#allocation3 + $0x1], 0  ;;  %s1003_s24 = smov 0   ;;  %s1005_s25 = smov 0  }
   0x2   :  { %s1007_s26 = smov 0   ;;  %s1009_s27 = smov 0  }
   0x3   :  { %s1011_s28 = smov 0   ;;  %s1013_s29 = smov 0  }
   0x4 LB: > { %s731_s30 = sadd.s32 4294967295, %s956_s29   ;;  %s732_s8 = sadd.s32 4294967294, %s956_s29   ;;  %s956_s29 = sphi %s1013_s29, %s20_s29   ;;  %s952_s28 = sphi %s1011_s28, %s1192_s28   ;;  %s948_s27 = sphi %s1009_s27, %s1191_s27   ;;  %s944_s26 = sphi %s1007_s26, %s1190_s26   ;;  %s940_s25 = sphi %s1005_s25, %s1189_s25   ;;  %s936_s24 = sphi %s1003_s24, %s1188_s24  }
   0x5   : > { %s32_s9 = sadd.s32 1, %s952_s28  ;;  %s195_s10 = sadd.s32 1, %s944_s26 }
   0x6   : > { %p34_p0 = scmp.ge.s32.totalorder %s32_s9, 2  ;;  %p205_p1 = scmp.ne.s32.totalorder %s944_s26, %s940_s25 }
   0x7   : > { %p206_p2 = scmp.eq.s32.totalorder %s731_s30, 1  ;;  %p211_p3 = scmp.ne.s32.totalorder %s940_s25, %s936_s24 }
   0x8   : > { %s1194_s9 = smov (%p34_p0, %s32_s9), 0  ;;  %p212_p5 = scmp.eq.s32.totalorder %s732_s8, 1 }
   0x9   : > { %p1043_p4 = por %p206_p2, %p205_p1  ;;  %s190_s12 = ssub.s32 %s952_s28, %s1194_s9 }
   0xa   : > { %p735_p6 = scmp.ge.s32.totalorder %s956_s29, 1  ;;  %p193_p7 = scmp.eq.s32.totalorder %s190_s12, 0 }
   0xb   : > { %p1050_p8 = por %p212_p5, %p211_p3  ;;  %p258_p9 = scmp.lt.s32.totalorder %s956_s29, 3 }
   0xc   : > { %s1056_s14 = scalar_select %p193_p7, %s944_s26, %s195_s10  }
   0xd   : > { %p259_p10 = pnand %p735_p6, %p258_p9 }
   0xe   : > { %p292_p11 = scmp.lt.s32.totalorder (!%p259_p10), %s948_s27, 1  ;;  %v300_v0 = vld [vmem:[%s1179_s1] sm:$0xff] (!%p259_p10)  ;;  %vm328_vm0 = vcmask (!%p259_p10), 31744   ;;  %v958_v2 = vmov (!%p259_p10), 0   ;;  %v306_v3 = vld [vmem:[%s1180_s2 + $0x10] sm:$0xff] (!%p259_p10)  ;;  %vm341_vm1 = vcmask (!%p259_p10), 1043456  }
   0xf   : > { %262 = sbr.rel (%p259_p10) target bundleno = 710 (0x2c6), region = 48  ;;  %772 = vmatprep.mubr.msk.f32.mxu0 (!%p259_p10), %vm328_vm0, %v300_v0  ;;  %v304_v1 = vld [vmem:[%s1180_s2] sm:$0xff] (!%p259_p10)  ;;  %876 = vset.pattern.permute.xlu0 (!%p259_p10), %v958_v2  ;;  %v305_v4 = vld [vmem:[%s1180_s2 + $0x8] sm:$0xff] (!%p259_p10)  ;;  %v307_v5 = vld [vmem:[%s1180_s2 + $0x18] sm:$0xff] (!%p259_p10)  ;;  %vm462_vm2 = vcmask (!%p259_p10), 261120   ;;  %v959_v37 = vmov (!%p259_p10), 0.0|0.0  }
  0x10   : > { %877 = vset.pattern.permute.xlu1 (!%p259_p10), %v958_v2  ;;  %310 = vperm.xlu0 (!%p259_p10), %876, %v304_v1   ;;  %v301_v7 = vld [vmem:[%s1179_s1 + $0x8] sm:$0xff] (!%p259_p10)  ;;  %v302_v8 = vld [vmem:[%s1179_s1 + $0x10] sm:$0xff] (!%p259_p10)  ;;  %v438_v9 = vld [vmem:[%s1182_s4] sm:$0xff] (!%p259_p10)  ;;  %vm960_vm3 = vmmov (!%p259_p10), 0   ;;  %v961_v38 = vmov (!%p259_p10), 0.0   ;;  %s289_s17 = sand.u32 (!%p259_p10), 1, %s940_s25  }
  0x11   : > { %320 = vperm.xlu1 (!%p259_p10), %877, %v306_v3   ;;  %v439_v10 = vld [vmem:[%s1182_s4 + $0x8] sm:$0xff] (!%p259_p10)  ;;  %v303_v11 = vld [vmem:[%s1179_s1 + $0x18] sm:$0xff] (!%p259_p10)  ;;  %v440_v12 = vld [vmem:[%s1182_s4 + $0x10] sm:$0xff] (!%p259_p10)  ;;  %s736_s18 = sshll.u32 (!%p259_p10), %s289_s17, 3  ;;  %s646_s8 = scalar_lea.sflag (!%p259_p10), [#allocation3], %s289_s17 }
  0x12   : > { %v441_v13 = vld [vmem:[%s1182_s4 + $0x18] sm:$0xff] (!%p259_p10)  ;;  %v565_v14 = vld [vmem:[%s1184_s6] sm:$0xff] (!%p259_p10)  ;;  %v435_v34 = vld [vmem:[%s1181_s3 + $0x8] sm:$0xff] (!%p259_p10)  ;;  %s291_s20 = scalar_lea.vmem (!%p259_p10), [#allocation2], %s736_s18 }
  0x13   : > { %v434_v15 = vld [vmem:[%s1181_s3] sm:$0xff] (!%p259_p10)  ;;  %v436_v35 = vld [vmem:[%s1181_s3 + $0x10] sm:$0xff] (!%p259_p10)  ;;  %v437_v36 = vld [vmem:[%s1181_s3 + $0x18] sm:$0xff] (!%p259_p10)  ;;  %s660_s21 = sshll.u32 (!%p259_p10), %s291_s20, 4  ;;  %s1133_s21 = int_to_ptr.vmem [resolvable:$true] %s660_s21 }
  0x14   : > { %315 = vperm.xlu0 (!%p259_p10), %876, %v305_v4   ;;  %786 = vmatprep.mubr.msk.f32.mxu1 (!%p259_p10), %vm462_vm2, %v434_v15  ;;  %v564_v57 = vld [vmem:[%s1183_s5] sm:$0xff] (!%p259_p10)  ;;  %s878_s10 = scalar_lea.vmem (!%p259_p10), %s1133_s21, 128 }
  0x15   : > { %325 = vperm.xlu1 (!%p259_p10), %877, %v307_v5   ;;  %p879_p12 = scmp.ne.s32.totalorder (!%p259_p10), %s1133_s21, %s878_s10 }
  0x16   : > { %s293_s19 = scalar_select %p292_p11, %s948_s27, 1 }
  0x17   : > { %p880_p13 = pnand %p879_p12, %p1043_p4 }
  0x18   : > { %s737_s22 = sshll.u32 %s293_s19, 2  ;;  %444 = vperm.xlu0 %876, %v438_v9   ;;  %s749_s19 = sshll.u32 %s948_s27, 7 }
  0x19   : > { %s298_s12 = scalar_lea.vmem %s1178_s0, %s737_s22  ;;  %449 = vperm.xlu1 %877, %v439_v10   ;;  %s1131_s30 = scalar_lea.hbm %s1185_s7, %s749_s19 }
  0x1a   : > { %v299_v6 = vld [vmem:[%s298_s12] sm:$0xf]  ;;  %p881_p0 = pneg %p880_p13  ;;  %s962_s27 = smov [#allocation2]  }
  0x1b   : > { %770 = vmatprep.subr.msk.mxu0 %vm341_vm1, %v299_v6  ;;  %s882_s12 = sshll.u32 %s962_s27, 4  ;;  %s883_s12 = int_to_ptr.vmem [resolvable:$false] %s882_s12 }
  0x1c   : > { %771 = vmatpush3.msk.msra.mxu0 %vm341_vm1, %v299_v6  ;;  %454 = vperm.xlu0 %876, %v440_v12   ;;  %s884_s15 = scalar_lea.vmem %s883_s12, 256  ;;  %p885_p1 = scmp.lt.s32.totalorder %s1133_s21, %s883_s12 }
  0x1d   : > { %773 = vmatmul.mubr.msk.f32.vlgmr.msra.gmra.mrb[0].mxu0 %vm328_vm0, %v301_v7  ;;  %459 = vperm.xlu1 %877, %v441_v13   ;;  %p886_p2 = scmp.lt.s32.totalorder %s884_s15, %s878_s10 }
  0x1e   : > { %775 = vmatprep.mubr.msk.f32.mxu0 %vm328_vm0, %v302_v8  ;;  %811 = vmatprep.subr.bf16.mxu0 %v959_v37 }
  0x1f   : > { %p887_p3 = por %p886_p2, %p885_p1 }
  0x20   : > { %568 = vperm.xlu0 %876, %v565_v14  }
  0x21   : > { %776 = vmatmul.mubr.msk.f32.gmra.mrb[2].mxu0 %vm328_vm0, %v303_v11  ;;  %p888_p5 = pnand %p887_p3, %p881_p0 }
  0x22   : > { %800 = vmatprep.mubr.msk.f32.mxu0 %vm960_vm3, %v961_v38 }
  0x8f   : > { %v311_v16 = vpop.permute.xlu0 %310 }
  0x90   : > { %v321_v17 = vpop.permute.xlu1 %320 }
  0x93   : > { %v316_v18 = vpop.permute.xlu0 %315 }
  0x94   : > { %v326_v24 = vpop.permute.xlu1 %325 }
  0x97   : > { %v445_v40 = vpop.permute.xlu0 %444 }
  0x98   : > { %v450_v39 = vpop.permute.xlu1 %449 }
  0x9b   : > { %v455_v49 = vpop.permute.xlu0 %454 }
  0x9c   : > { %v460_v46 = vpop.permute.xlu1 %459 }
  0x9f   : > { %v569_v58 = vpop.permute.xlu0 %568 }
  0xf0   : > { %v774_v19 = vpop.f32.mrb[0].mxu0 }
  0xf1   : > { %v417_v20 = vadd.f32 %v774_v19, %v316_v18  ;;  %v411_v21 = vpop.f32.mrb[1].mxu0 }
  0xf2   : > { %v412_v22 = vadd.f32 %v411_v21, %v311_v16 }
  0xf3   : > { %v431_v23 = vmax.f32 %v417_v20, 0.0 }
  0xf4   : > { %v430_v25 = vmax.f32 %v412_v22, 0.0  ;;  %v777_v26 = vpop.f32.mrb[2].mxu0 }
  0xf5   : > { %v427_v27 = vadd.f32 %v777_v26, %v326_v24  ;;  %v421_v28 = vpop.f32.mrb[3].mxu0 }
  0xf6   : > { %v422_v29 = vadd.f32 %v421_v28, %v321_v17  ;;  %v803_v30 = vpack.c.bf16 %v431_v23, %v430_v25 }
  0xf7   : > { %v433_v31 = vmax.f32 %v427_v27, 0.0 }
  0xf8   : > { %v432_v32 = vmax.f32 %v422_v29, 0.0  ;;  %804 = vmatprep.subr.bf16.mxu1 %v803_v30 }
  0xf9   : > { %806 = vmatpush3.bf16.msra.mxu1 %v803_v30 }
  0xfa   : > { %v807_v33 = vpack.c.bf16 %v433_v31, %v432_v32 }
  0xfc   : > { %808 = vmatprep.subr.bf16.mxu1 %v807_v33 }
  0xfd   : > { %810 = vmatpush3.bf16.msra.mxu1 %v807_v33 }
 0x100   : > { %787 = vmatmul.mubr.msk.f32.vlgmr.msra.gmra.mrb[0].mxu1 %vm462_vm2, %v435_v34 }
 0x101   : > { %789 = vmatprep.mubr.msk.f32.mxu1 %vm462_vm2, %v436_v35 }
 0x104   : > { %790 = vmatmul.mubr.msk.f32.gmra.mrb[2].mxu1 %vm462_vm2, %v437_v36 }
 0x1d3   : > { %v788_v41 = vpop.f32.mrb[0].mxu1 }
 0x1d4   : > { %v547_v42 = vadd.f32 %v788_v41, %v450_v39  ;;  %v541_v43 = vpop.f32.mrb[1].mxu1 }
 0x1d5   : > { %v542_v44 = vadd.f32 %v541_v43, %v445_v40 }
 0x1d6   : > { %v561_v45 = vmax.f32 %v547_v42, 0.0 }
 0x1d7   : > { %v560_v47 = vmax.f32 %v542_v44, 0.0  ;;  %v791_v48 = vpop.f32.mrb[2].mxu1 }
 0x1d8   : > { %v557_v50 = vadd.f32 %v791_v48, %v460_v46  ;;  %v551_v51 = vpop.f32.mrb[3].mxu1 }
 0x1d9   : > { %v812_v52 = vpack.c.bf16 %v561_v45, %v560_v47  ;;  %v552_v53 = vadd.f32 %v551_v51, %v455_v49 }
 0x1da   : > { %v563_v54 = vmax.f32 %v557_v50, 0.0 }
 0x1db   : > { %v562_v55 = vmax.f32 %v552_v53, 0.0  ;;  %813 = vmatpush3.bf16.msra.mxu0 %v812_v52 }
 0x1dc   : > { %814 = vmatprep.subr.bf16.mxu0 %v959_v37 }
 0x1dd   : > { %v815_v56 = vpack.c.bf16 %v563_v54, %v562_v55 }
 0x1df   : > { %816 = vmatpush3.bf16.msra.mxu0 %v815_v56 }
 0x1e2   : > { %801 = vmatmul.mubr.msk.f32.vlgmr.msra.gmra.mrb[4].mxu0 %vm462_vm2, %v564_v57 }
 0x2b5   : > { %v640_v59 = vpop.f32.mrb[4].mxu0 }
 0x2b6   : > { %v641_v60 = vadd.f32 %v640_v59, %v569_v58  ;;  %v802_v61 = vpop.f32.mrb[5].mxu0 }
 0x2b8   : > { %644 = vst [vmem:[%s291_s20] sm:$0xff] %v641_v60 }
 0x2b9   : > { %891 = shalt.err (!%p888_p5)
}
 0x2ba   : > { %s892_s16 = scalar_lea.hbm %s1131_s30, 128  ;;  %s896_s19 = scalar_lea.hbm %s1185_s7, 256 }
 0x2bb   : > { %p893_p6 = scmp.ne.s32.totalorder %s1131_s30, %s892_s16  ;;  %p897_p10 = scmp.lt.u32.totalorder %s1131_s30, %s1185_s7 }
 0x2bc   : > { %p898_p11 = scmp.lt.u32.totalorder %s896_s19, %s892_s16  ;;  %p900_p13 = scmp.lt.u32.totalorder %s892_s16, %s1131_s30 }
 0x2bd   : > { %p894_p7 = pnand %p893_p6, %p1043_p4 }
 0x2be   : > { %p899_p12 = por %p898_p11, %p897_p10 }
 0x2bf   : > { %p895_p9 = pneg %p894_p7 }
 0x2c0   : > { %p901_p0 = por %p900_p13, %p899_p12 }
 0x2c2   : > { %p902_p1 = pnand %p901_p0, %p895_p9 }
 0x2c4   : > { %905 = shalt.err (!%p902_p1)
}
 0x2c5   : > { %817 = dma.vmem_to_hbm [thread:$0]  (%p1043_p4), %s1133_s21, 128, %s1131_s30, %s646_s8  }
 0x2c6 PF: > { %p823_p2 = scmp.ge.s32.totalorder %s956_s29, 2  ;;  %s672_s22 = sand.u32 1, %s936_s24  }
 0x2c7   : > { %s673_s10 = scalar_lea.sflag [#allocation3], %s672_s22 }
 0x2c8   : > { %p820_p3 = pnand %p823_p2, %p1050_p8 }
 0x2ca   : > { %931 = dma.done.wait (!%p820_p3), %s673_s10, 128  }
 0x2cb   : > { %933 = vsyncadd (!%p820_p3), %s673_s10, 4294967168  ;;  %s20_s29 = sadd.s32 1, %s956_s29   ;;  %s1188_s24 = smov %s940_s25 }
 0x2cc   : > { %p17_p5 = scmp.ge.s32.totalorder %s20_s29, 4   ;;  %s1189_s25 = smov %s944_s26 }
 0x2cd   : > { %s1190_s26 = smov %s1056_s14  ;;  %s1191_s27 = smov %s952_s28 }
 0x2ce   : > { %s1192_s28 = smov %s1194_s9  ;;  %19 = sbr.rel (!%p17_p5) target bundleno = 4 (0x4), region = 83 }
 0x2d5   :  { %678 = vsyncpa [#allocation3], 1 }
 0x2d6   :  { %680 = vsyncpa [#allocation3 + $0x1], 1 }

</bundles_post_ra>
